<compile_context>
chip_gen: v5e
topology: v5e:2x2
jax: 0.10.0
libtpu: 0.0.40
codegen_flags: <defaults>
</compile_context>

<pallas_src>
import functools
import math

import jax
import jax.numpy as jnp
from jax.experimental import pallas as pl
from jax.experimental.pallas import tpu as pltpu


def _wbce_kernel(x_ref, t_ref, s1_ref, s2_ref, *, hard_labels):
    """One (TG, SUB, L) lane-dense tile of the streaming reduction.

    s1 accumulates sum over rows of t*log(x); s2 accumulates sum over rows of
    (1-t)*log(1-x).  Both are (SUB, L) f32 OUTPUT blocks that stay resident across
    the reduction (i) axis — they double as the accumulators.  Weights, lane->class
    folding, padding correction and the mean are applied in plain JAX afterwards.
    """
    i = pl.program_id(1)

    @pl.when(i == 0)
    def _init():
        s1_ref[...] = jnp.zeros_like(s1_ref)
        s2_ref[...] = jnp.zeros_like(s2_ref)

    x = x_ref[...].astype(jnp.float32)      # (TG, SUB, L)
    t = t_ref[...].astype(jnp.float32)      # (TG, SUB, L)

    if hard_labels:
        # One transcendental per element (EUP relief).  Exact for {0,1} targets.
        pos = t > 0.5
        lg = jnp.log(jnp.where(pos, x, 1.0 - x))
        term1 = jnp.where(pos, lg, 0.0)
        term2 = jnp.where(pos, 0.0, lg)
    else:
        term1 = t * jnp.log(x)              # EUP + VPU
        term2 = (1.0 - t) * jnp.log(1.0 - x)

    # In-register partial reduction over the tile-group axis; only the small
    # (SUB, L) resident output block is read-modified-written per step.
    s1_ref[...] += term1.sum(axis=0)
    s2_ref[...] += term2.sum(axis=0)


def weighted_bce_loss(sigmoid_x, targets, pos_weight, weight=None, *,
                      size_average=True, reduce=True,
                      hard_labels=False, bf16_stream=False,
                      target_block_bytes=2 * 1024 * 1024, num_parallel=2):
    """Pallas implementation of weighted_binary_cross_entropy (reduce=True paths).

    sigmoid_x, targets: [..., C] probabilities in (0, 1) and targets (same shape).
    pos_weight:         [C] or [1, C]   (weight for positive samples)
    weight:             [C] or [1, C]   (per-class weight; defaults to ones)
    Returns a scalar: mean loss if size_average else summed loss.
    """
    if targets.shape != sigmoid_x.shape:
        raise ValueError(
            f"Target size ({targets.shape}) must be the same as input size ({sigmoid_x.shape})")
    if not reduce:
        # TODO(synk): reduce=False (full elementwise [N, C] loss) needs a separate
        # reduction-free elementwise kernel; only the reduced path is implemented.
        raise NotImplementedError("reduce=False is not implemented in the Pallas kernel")

    C = sigmoid_x.shape[-1]
    x = sigmoid_x.reshape(-1, C)
    t = targets.reshape(-1, C)
    N = x.shape[0]

    pw_c = jnp.asarray(pos_weight, jnp.float32).reshape(-1)
    if weight is None:
        w_c = jnp.ones((C,), jnp.float32)
    else:
        w_c = jnp.asarray(weight, jnp.float32).reshape(-1)

    if bf16_stream:
        # Clamp before narrowing so bf16 rounding can never produce exact 0.0 or 1.0
        # (which would give log(0)/0*inf NaNs).  Targets 0/1 are exact in bf16.
        x = jnp.clip(x.astype(jnp.float32), 2.0 ** -100, 1.0 - 2.0 ** -8).astype(jnp.bfloat16)
        t = t.astype(jnp.bfloat16)

    # ---- lane-dense repacking: k original rows per lane-dense row of width L ----
    L = (C * 128) // math.gcd(C, 128)          # smallest multiple of C and of 128
    k = L // C
    R = pl.cdiv(N, k)                          # lane-dense rows needed

    # SUB = sublane rows per resident partial-sum block (multiple of 16 for bf16
    # tiling; shrinks for very wide L to keep the output partials small).
    sub = min(64, max(16, ((128 * 1024) // (L * 4)) // 16 * 16))
    G = pl.cdiv(R, sub)                        # total SUB-row groups

    P = max(1, int(num_parallel))              # leading "parallel" axis (v7x: 2 TCs)
    itemsize = max(x.dtype.itemsize, t.dtype.itemsize)
    tg_cap = max(1, target_block_bytes // (sub * L * itemsize))
    g_core = pl.cdiv(G, P)
    n_steps = pl.cdiv(g_core, tg_cap)
    TG = pl.cdiv(g_core, n_steps)              # groups per step (balanced -> minimal pad)
    G_pad = P * n_steps * TG
    R_pad = G_pad * sub
    N_pad = R_pad * k

    if N_pad != N:
        pad = N_pad - N
        # x padded with 0.5 (safe for both logs), t padded with 0.  Each padded
        # element therefore contributes exactly log(0.5) to s2 — corrected below.
        x = jnp.pad(x, ((0, pad), (0, 0)), constant_values=0.5)
        t = jnp.pad(t, ((0, pad), (0, 0)), constant_values=0.0)
    x3 = x.reshape(G_pad, sub, L)
    t3 = t.reshape(G_pad, sub, L)

    kernel = functools.partial(_wbce_kernel, hard_labels=hard_labels)
    part_shape = jax.ShapeDtypeStruct((P * sub, L), jnp.float32)

    s1, s2 = pl.pallas_call(
        kernel,
        out_shape=(part_shape, part_shape),
        grid_spec=pltpu.PrefetchScalarGridSpec(
            num_scalar_prefetch=0,
            grid=(P, n_steps),
            in_specs=[
                pl.BlockSpec((TG, sub, L), lambda c, i: (c * n_steps + i, 0, 0)),
                pl.BlockSpec((TG, sub, L), lambda c, i: (c * n_steps + i, 0, 0)),
            ],
            out_specs=[
                pl.BlockSpec((sub, L), lambda c, i: (c, 0)),   # per-core resident partials
                pl.BlockSpec((sub, L), lambda c, i: (c, 0)),
            ],
        ),
        compiler_params=pltpu.CompilerParams(
            dimension_semantics=("parallel", "arbitrary"),
            vmem_limit_bytes=32 * 1024 * 1024,
        ),
    )(x3, t3)

    # ---- tiny finalize in plain JAX (few KiB of partials) ----
    s1_per_class = s1.sum(axis=0).reshape(k, C).sum(axis=0)   # lane l -> class l % C
    s2_per_class = s2.sum(axis=0).reshape(k, C).sum(axis=0)
    if N_pad != N:
        # Analytic removal of the padded contribution: (N_pad - N) rows, each adding
        # exactly log(0.5) per class to s2 (and exactly 0 to s1).
        s2_per_class = s2_per_class - jnp.float32((N_pad - N) * math.log(0.5))

    loss_sum = -jnp.sum(w_c * (pw_c * s1_per_class + s2_per_class))
    if size_average:
        return loss_sum / jnp.float32(N * C)
    return loss_sum


class WeightedBCELoss:
    """Mirror of torch_ecg's WeightedBCELoss (reduce=True paths) on the Pallas kernel."""

    def __init__(self, pos_weight, weight=None, PosWeightIsDynamic=False,
                 WeightIsDynamic=False, size_average=True, reduce=True):
        self.pos_weight = jnp.asarray(pos_weight, jnp.float32)
        self.weight = (jnp.ones_like(self.pos_weight) if weight is None
                       else jnp.asarray(weight, jnp.float32))
        self.PosWeightIsDynamic = PosWeightIsDynamic
        # WeightIsDynamic accepted but unused, matching the torch module.
        self.size_average = size_average
        self.reduce = reduce

    def __call__(self, input, target, **kwargs):
        pw = self.pos_weight
        if self.PosWeightIsDynamic:
            positive_counts = target.sum(axis=0, keepdims=True).astype(jnp.float32)
            n_batch = target.shape[0]
            pw = (n_batch - positive_counts) / (positive_counts + 1e-07)
        return weighted_bce_loss(input, target, pw, self.weight,
                                 size_average=self.size_average, reduce=self.reduce,
                                 **kwargs)


def _reference(sigmoid_x, targets, pos_weight, weight=None, size_average=True):
    x = sigmoid_x.astype(jnp.float32)
    t = targets.astype(jnp.float32)
    pw = jnp.asarray(pos_weight, jnp.float32).reshape(1, -1)
    w = (jnp.ones_like(pw) if weight is None
         else jnp.asarray(weight, jnp.float32).reshape(1, -1))
    loss = -pw * t * jnp.log(x) - (1.0 - t) * jnp.log(1.0 - x)
    loss = loss * w
    return jnp.mean(loss) if size_average else jnp.sum(loss)


def _make_inputs(key, N, C):
    k1, k2, k3, k4 = jax.random.split(key, 4)
    logits = jax.random.normal(k1, (N, C), jnp.float32)
    x = jnp.clip(jax.nn.sigmoid(logits), 1e-6, 1.0 - 1e-6)
    t = (jax.random.uniform(k2, (N, C)) > 0.5).astype(jnp.float32)
    pw = 0.5 + jax.random.uniform(k3, (C,), jnp.float32) * 2.0
    w = 0.8 + jax.random.uniform(k4, (1, C), jnp.float32) * 0.4
    return x, t, pw, w


if __name__ == "__main__":
    # Case 1: small [N, C], padded path, mean reduction (default settings).
    x, t, pw, w = _make_inputs(jax.random.PRNGKey(0), N=64, C=16)
    got = jax.block_until_ready(weighted_bce_loss(x, t, pw, w))
    ref = _reference(x, t, pw, w)
    assert jnp.allclose(got, ref, rtol=1e-4, atol=1e-5), (float(got), float(ref))

    # Case 2: ragged N, sum reduction.
    x, t, pw, w = _make_inputs(jax.random.PRNGKey(1), N=200, C=16)
    got = jax.block_until_ready(weighted_bce_loss(x, t, pw, w, size_average=False))
    ref = _reference(x, t, pw, w, size_average=False)
    assert jnp.allclose(got, ref, rtol=1e-5, atol=1e-2), (float(got), float(ref))

    # Case 3: hard-label fast path + bf16 streaming (compare against the same
    # clamped/bf16-rounded values the kernel streams).
    x, t, pw, w = _make_inputs(jax.random.PRNGKey(2), N=256, C=16)
    got = jax.block_until_ready(
        weighted_bce_loss(x, t, pw, w, hard_labels=True, bf16_stream=True))
    x_q = jnp.clip(x, 2.0 ** -100, 1.0 - 2.0 ** -8).astype(jnp.bfloat16).astype(jnp.float32)
    t_q = t.astype(jnp.bfloat16).astype(jnp.float32)
    ref = _reference(x_q, t_q, pw, w)
    assert jnp.allclose(got, ref, rtol=1e-4, atol=1e-5), (float(got), float(ref))

    # Case 4: module-style wrapper with dynamic pos_weight.
    x, t, _, w = _make_inputs(jax.random.PRNGKey(3), N=128, C=32)
    crit = WeightedBCELoss(pos_weight=jnp.ones((1, 32)), weight=w, PosWeightIsDynamic=True)
    got = jax.block_until_ready(crit(x, t))
    pos_counts = t.sum(axis=0, keepdims=True)
    pw_dyn = (128 - pos_counts) / (pos_counts + 1e-07)
    ref = _reference(x, t, pw_dyn, w)
    assert jnp.allclose(got, ref, rtol=1e-4, atol=1e-5), (float(got), float(ref))

    print("KERNEL_OK")
</pallas_src>

<mosaic_0001>
module attributes {stable_mosaic.version = 11 : i64} {
  func.func @_wbce_kernel(%arg0: i32, %arg1: i32, %arg2: memref<1x64x128xf32, #tpu.memory_space<vmem>>, %arg3: memref<1x64x128xf32, #tpu.memory_space<vmem>>, %arg4: memref<64x128xf32, #tpu.memory_space<vmem>>, %arg5: memref<64x128xf32, #tpu.memory_space<vmem>>) attributes {dimension_semantics = [#tpu.dimension_semantics<parallel>, #tpu.dimension_semantics<arbitrary>], iteration_bounds = array<i64: 2, 1>, scalar_prefetch = 0 : i64, scratch_operands = 0 : i64, tpu.core_type = #tpu.core_type<tc>, window_params = [{transform_indices = @transform_0, window_bounds = array<i64: 1, 64, 128>}, {transform_indices = @transform_1, window_bounds = array<i64: 1, 64, 128>}, {transform_indices = @transform_2, window_bounds = array<i64: 64, 128>}, {transform_indices = @transform_3, window_bounds = array<i64: 64, 128>}]} {
    %c0_i32 = arith.constant 0 : i32
    %0 = arith.cmpi eq, %arg1, %c0_i32 : i32
    %1 = arith.extui %0 : i1 to i32
    %c0_i32_0 = arith.constant 0 : i32
    %2 = arith.cmpi ne, %1, %c0_i32_0 : i32
    scf.if %2 {
      %cst_17 = arith.constant 0.000000e+00 : f32
      %21 = vector.broadcast %cst_17 : f32 to vector<64x128xf32>
      %c0_18 = arith.constant 0 : index
      %c0_19 = arith.constant 0 : index
      %22 = vector.load %arg4[%c0_18, %c0_19] : memref<64x128xf32, #tpu.memory_space<vmem>>, vector<64x128xf32>
      tpu.vector_store %arg4[%c0_18, %c0_19], %21 {strides = array<i32>} : memref<64x128xf32, #tpu.memory_space<vmem>>, vector<64x128xf32>,
      %cst_20 = arith.constant 0.000000e+00 : f32
      %23 = vector.broadcast %cst_20 : f32 to vector<64x128xf32>
      %c0_21 = arith.constant 0 : index
      %c0_22 = arith.constant 0 : index
      %24 = vector.load %arg5[%c0_21, %c0_22] : memref<64x128xf32, #tpu.memory_space<vmem>>, vector<64x128xf32>
      tpu.vector_store %arg5[%c0_21, %c0_22], %23 {strides = array<i32>} : memref<64x128xf32, #tpu.memory_space<vmem>>, vector<64x128xf32>,
    } else {
    }
    %c0 = arith.constant 0 : index
    %c0_1 = arith.constant 0 : index
    %c0_2 = arith.constant 0 : index
    %3 = vector.load %arg2[%c0, %c0_1, %c0_2] : memref<1x64x128xf32, #tpu.memory_space<vmem>>, vector<1x64x128xf32>
    %c0_3 = arith.constant 0 : index
    %c0_4 = arith.constant 0 : index
    %c0_5 = arith.constant 0 : index
    %4 = vector.load %arg3[%c0_3, %c0_4, %c0_5] : memref<1x64x128xf32, #tpu.memory_space<vmem>>, vector<1x64x128xf32>
    %5 = math.log %3 : vector<1x64x128xf32>
    %6 = arith.mulf %4, %5 : vector<1x64x128xf32>
    %cst = arith.constant 1.000000e+00 : f32
    %7 = vector.broadcast %cst : f32 to vector<1x64x128xf32>
    %8 = arith.subf %7, %4 : vector<1x64x128xf32>
    %cst_6 = arith.constant 1.000000e+00 : f32
    %9 = vector.broadcast %cst_6 : f32 to vector<1x64x128xf32>
    %10 = arith.subf %9, %3 : vector<1x64x128xf32>
    %11 = math.log %10 : vector<1x64x128xf32>
    %12 = arith.mulf %8, %11 : vector<1x64x128xf32>
    %c0_7 = arith.constant 0 : index
    %c0_8 = arith.constant 0 : index
    %13 = vector.load %arg4[%c0_7, %c0_8] : memref<64x128xf32, #tpu.memory_space<vmem>>, vector<64x128xf32>
    %cst_9 = arith.constant dense<0.000000e+00> : vector<64x128xf32>
    %14 = vector.multi_reduction <add>, %6, %cst_9 [0] : vector<1x64x128xf32> to vector<64x128xf32>
    %15 = arith.addf %13, %14 : vector<64x128xf32>
    %c0_10 = arith.constant 0 : index
    %c0_11 = arith.constant 0 : index
    %16 = vector.load %arg4[%c0_10, %c0_11] : memref<64x128xf32, #tpu.memory_space<vmem>>, vector<64x128xf32>
    tpu.vector_store %arg4[%c0_10, %c0_11], %15 {strides = array<i32>} : memref<64x128xf32, #tpu.memory_space<vmem>>, vector<64x128xf32>,
    %c0_12 = arith.constant 0 : index
    %c0_13 = arith.constant 0 : index
    %17 = vector.load %arg5[%c0_12, %c0_13] : memref<64x128xf32, #tpu.memory_space<vmem>>, vector<64x128xf32>
    %cst_14 = arith.constant dense<0.000000e+00> : vector<64x128xf32>
    %18 = vector.multi_reduction <add>, %12, %cst_14 [0] : vector<1x64x128xf32> to vector<64x128xf32>
    %19 = arith.addf %17, %18 : vector<64x128xf32>
    %c0_15 = arith.constant 0 : index
    %c0_16 = arith.constant 0 : index
    %20 = vector.load %arg5[%c0_15, %c0_16] : memref<64x128xf32, #tpu.memory_space<vmem>>, vector<64x128xf32>
    tpu.vector_store %arg5[%c0_15, %c0_16], %19 {strides = array<i32>} : memref<64x128xf32, #tpu.memory_space<vmem>>, vector<64x128xf32>,
    return
  }
  func.func @transform_0(%arg0: i32, %arg1: i32) -> (i32, i32, i32) {
    %c1_i32 = arith.constant 1 : i32
    %0 = arith.muli %arg0, %c1_i32 : i32
    %1 = arith.addi %0, %arg1 : i32
    %c0_i32 = arith.constant 0 : i32
    %c0_i32_0 = arith.constant 0 : i32
    %c0_i32_1 = arith.constant 0 : i32
    return %1, %c0_i32, %c0_i32_0 : i32, i32, i32
  }
  func.func @transform_1(%arg0: i32, %arg1: i32) -> (i32, i32, i32) {
    %c1_i32 = arith.constant 1 : i32
    %0 = arith.muli %arg0, %c1_i32 : i32
    %1 = arith.addi %0, %arg1 : i32
    %c0_i32 = arith.constant 0 : i32
    %c0_i32_0 = arith.constant 0 : i32
    %c0_i32_1 = arith.constant 0 : i32
    return %1, %c0_i32, %c0_i32_0 : i32, i32, i32
  }
  func.func @transform_2(%arg0: i32, %arg1: i32) -> (i32, i32) {
    %c0_i32 = arith.constant 0 : i32
    %c0_i32_0 = arith.constant 0 : i32
    return %arg0, %c0_i32 : i32, i32
  }
  func.func @transform_3(%arg0: i32, %arg1: i32) -> (i32, i32) {
    %c0_i32 = arith.constant 0 : i32
    %c0_i32_0 = arith.constant 0 : i32
    return %arg0, %c0_i32 : i32, i32
  }
}

</mosaic_0001>

<bundles_post_ra>
// kernel: tpu_custom_call.1
= control target key start
LH: loop header
LB: loop body
LE: loop exit
PB: predicated region body
PF: predicated region fallthrough
CT: control target
= control target key end

     0   :  { %s1155_s0 = inlined_call_operand.hbm [shape: f32[2,64,128], index: 0, kind: input, shape index: {}]   ;;  %s1156_s1 = inlined_call_operand.hbm [shape: f32[2,64,128], index: 1, kind: input, shape index: {}]   ;;  %s1157_s2 = inlined_call_operand.hbm [shape: f32[128,128], index: 2, kind: output, shape index: {0}]   ;;  %s1158_s3 = inlined_call_operand.hbm [shape: f32[128,128], index: 3, kind: output, shape index: {1}]  }
   0x1   :  { %1159 = sst [smem:[#allocation14_spill]] %s1155_s0 }
   0x2   :  { %9 = vsyncpa [#allocation3], 0 }
   0x3   :  { %11 = vsyncpa [#allocation3 + $0x1], 0 }
   0x4   :  { %12 = vsyncpa [#allocation6], 0 }
   0x5   :  { %14 = vsyncpa [#allocation6 + $0x1], 0 }
   0x6   :  { %15 = vsyncpa [#allocation4], 0 }
   0x7   :  { %17 = vsyncpa [#allocation4 + $0x1], 0 }
   0x8   :  { %18 = vsyncpa [#allocation9], 0 }
   0x9   :  { %20 = vsyncpa [#allocation9 + $0x1], 0  ;;  %s947_s12 = smov 0   ;;  %s949_s13 = smov 0  }
   0xa   :  { %s951_s14 = smov 0   ;;  %s953_s15 = smov 0  }
   0xb   :  { %s955_s16 = smov 0   ;;  %s957_s17 = smov 0  }
   0xc LB: > { %s607_s18 = sadd.s32 4294967295, %s921_s17   ;;  %s608_s19 = sadd.s32 4294967294, %s921_s17   ;;  %s921_s17 = sphi %s957_s17, %s26_s17   ;;  %s917_s16 = sphi %s955_s16, %s1170_s16   ;;  %s913_s15 = sphi %s953_s15, %s1169_s15   ;;  %s909_s14 = sphi %s951_s14, %s1168_s14   ;;  %s905_s13 = sphi %s949_s13, %s1167_s13   ;;  %s901_s12 = sphi %s947_s12, %s1166_s12  }
   0xd   : > { %s38_s20 = sadd.s32 1, %s917_s16  ;;  %s47_s21 = sadd.s32 1, %s909_s14 }
   0xe   : > { %p40_p0 = scmp.ge.s32.totalorder %s38_s20, 2  ;;  %p54_p1 = scmp.ne.s32.totalorder %s909_s14, %s905_s13 }
   0xf   : > { %p55_p2 = scmp.eq.s32.totalorder %s921_s17, 0  ;;  %p60_p3 = scmp.ne.s32.totalorder %s905_s13, %s901_s12 }
  0x10   : > { %s1172_s20 = smov (%p40_p0, %s38_s20), 0  ;;  %p61_p5 = scmp.eq.s32.totalorder %s607_s18, 0 }
  0x11   : > { %p988_p4 = por %p55_p2, %p54_p1  ;;  %s44_s23 = ssub.s32 %s917_s16, %s1172_s20 }
  0x12   : > { %p112_p6 = scmp.eq.s32.totalorder %s607_s18, 1  ;;  %p45_p7 = scmp.eq.s32.totalorder %s44_s23, 0 }
  0x13   : > { %p994_p8 = por %p61_p5, %p60_p3  ;;  %p118_p10 = scmp.eq.s32.totalorder %s608_s19, 1 }
  0x14   : > { %p998_p9 = por %p112_p6, %p54_p1  ;;  %p610_p12 = scmp.ge.s32.totalorder %s921_s17, 2 }
  0x15   : > { %s1003_s26 = scalar_select %p45_p7, %s909_s14, %s47_s21  }
  0x16   : > { %p1005_p11 = por %p118_p10, %p60_p3  ;;  %p656_p13 = scmp.lt.s32.totalorder %s921_s17, 2 }
  0x17   : > { %s1012_s28 = sand.u32 1, %s909_s14   ;;  %s630_s30 = sshll.u32 %s917_s16, 6 }
  0x18   : > { %s611_s29 = sshll.u32 %s1012_s28, 6  ;;  %s1164_s0 = sld [smem:[#allocation14_spill]] }
  0x19   : > { %s168_s7 = scalar_lea.vmem [#allocation2], %s611_s29  ;;  %p1021_p0 = pnand %p656_p13, %p988_p4 }
  0x1a   : > { %s177_s8 = sshll.u32 %s168_s7, 4  ;;  %p617_p1 = scmp.ge.s32.totalorder %s921_s17, 1  ;;  %s178_s8 = int_to_ptr.vmem [resolvable:$true] %s177_s8 }
  0x1b   : > { %s165_s11 = scalar_lea.sflag [#allocation3], %s1012_s28  ;;  %s923_s18 = smov 128  }
  0x1c   : > { %s924_s19 = smov 8   ;;  %p208_p2 = scmp.lt.s32.totalorder %s921_s17, 3 }
  0x1d   : > { %s197_s4 = scalar_lea.hbm %s1156_s1, %s630_s30  ;;  %s191_s22 = scalar_lea.vmem [#allocation5], %s611_s29 }
  0x1e   : > { %s174_s6 = scalar_lea.hbm %s1164_s0, %s630_s30  ;;  %p209_p3 = pnand %p617_p1, %p208_p2 }
  0x1f   : > { %s175_s9 = sshll.u32 %s174_s6, 4  ;;  %s198_s5 = sshll.u32 %s197_s4, 4  ;;  %s176_s9 = int_to_ptr.hbm [resolvable:$true] %s175_s9  ;;  %s199_s5 = int_to_ptr.hbm [resolvable:$true] %s198_s5 }
  0x20   : > { %645 = dma.hbm_to_vmem [thread:$0]  (!%p1021_p0), %s176_s9, 1024, %s178_s8, %s165_s11, %s923_s18, %s923_s18, %s924_s19  }
  0x21   : > { %s200_s6 = sshll.u32 %s191_s22, 4  ;;  %s188_s7 = scalar_lea.sflag [#allocation6], %s1012_s28  ;;  %s201_s6 = int_to_ptr.vmem [resolvable:$true] %s200_s6 }
  0x22   : > { %648 = dma.hbm_to_vmem [thread:$0]  (!%p1021_p0), %s199_s5, 1024, %s201_s6, %s188_s7, %s923_s18, %s923_s18, %s924_s19  }
  0x23   : > { %212 = sbr.rel (%p209_p3) target bundleno = 86 (0x56), region = 28  ;;  %s1037_s0 = sand.u32 (!%p209_p3), 1, %s905_s13  }
  0x24   : > { %s1040_s8 = sshll.u32 (!%p209_p3), %s1037_s0, 6  ;;  %s215_s30 = scalar_lea.sflag (!%p209_p3), [#allocation3], %s1037_s0 }
  0x25   : > { %s218_s9 = scalar_lea.vmem (!%p209_p3), [#allocation2], %s1040_s8 }
  0x28   : > { %884 = dma.done.wait (%p994_p8), %s215_s30, 1024  }
  0x29   : > { %886 = vsyncadd (%p994_p8), %s215_s30, 4294966272  ;;  %s225_s28 = scalar_lea.sflag [#allocation6], %s1037_s0  ;;  %s1050_s29 = scalar_lea.vmem [#allocation5], %s1040_s8 }
  0x2a   : > { %888 = dma.done.wait (%p994_p8), %s225_s28, 1024  }
  0x2b   : > { %890 = vsyncadd (%p994_p8), %s225_s28, 4294966272  ;;  %v286_v0 = vld [vmem:[%s218_s9] sm:$0xff]  ;;  %v287_v1 = vld [vmem:[%s218_s9 + $0x8] sm:$0xff]  ;;  %s1074_s24 = scalar_lea.vmem [#allocation7], %s1040_s8  ;;  %s632_s10 = sshll.u32 %s913_s15, 6 }
  0x2c   : > { %711 = vlog2.f32 %v286_v0  ;;  %v288_v2 = vld [vmem:[%s218_s9 + $0x10] sm:$0xff]  ;;  %v289_v3 = vld [vmem:[%s218_s9 + $0x18] sm:$0xff]  ;;  %v1057_v4 = vld [vmem:[%s1050_s29] sm:$0xff]  ;;  %v334_v9 = vsub.f32 1.0, %v286_v0  ;;  %v335_v11 = vsub.f32 1.0, %v287_v1  ;;  %s447_s18 = scalar_lea.hbm %s1157_s2, %s632_s10  ;;  %s448_s19 = sshll.u32 %s1074_s24, 4  ;;  %s1100_s19 = int_to_ptr.vmem [resolvable:$true] %s448_s19 }
  0x2d   : > { %713 = vlog2.f32 %v287_v1  ;;  %v1060_v5 = vld [vmem:[%s1050_s29 + $0x8] sm:$0xff]  ;;  %v290_v6 = vld [vmem:[%s218_s9 + $0x20] sm:$0xff]  ;;  %v1063_v7 = vld [vmem:[%s1050_s29 + $0x10] sm:$0xff]  ;;  %v326_v14 = vsub.f32 1.0, %v1057_v4  ;;  %v336_v16 = vsub.f32 1.0, %v288_v2  ;;  %v337_v20 = vsub.f32 1.0, %v289_v3  ;;  %s464_s5 = scalar_lea.hbm %s1158_s3, %s632_s10 }
  0x2e   : > { %715 = vlog2.f32 %v288_v2  ;;  %v291_v8 = vld [vmem:[%s218_s9 + $0x28] sm:$0xff]  ;;  %v292_v10 = vld [vmem:[%s218_s9 + $0x30] sm:$0xff]  ;;  %v293_v13 = vld [vmem:[%s218_s9 + $0x38] sm:$0xff]  ;;  %v327_v15 = vsub.f32 1.0, %v1060_v5  ;;  %v328_v19 = vsub.f32 1.0, %v1063_v7  ;;  %v338_v23 = vsub.f32 1.0, %v290_v6 }
  0x2f   : > { %717 = vlog2.f32 %v289_v3  ;;  %v339_v24 = vsub.f32 1.0, %v291_v8  ;;  %v340_v28 = vsub.f32 1.0, %v292_v10  ;;  %v341_v32 = vsub.f32 1.0, %v293_v13  ;;  %v297_v35 = vld [vmem:[%s1050_s29 + $0x18] sm:$0xff]  ;;  %v298_v39 = vld [vmem:[%s1050_s29 + $0x20] sm:$0xff]  ;;  %v299_v43 = vld [vmem:[%s1050_s29 + $0x28] sm:$0xff] }
  0x30   : > { %719 = vlog2.f32 %v290_v6  ;;  %v300_v47 = vld [vmem:[%s1050_s29 + $0x30] sm:$0xff]  ;;  %v301_v51 = vld [vmem:[%s1050_s29 + $0x38] sm:$0xff]  ;;  %v329_v56 = vsub.f32 1.0, %v297_v35  ;;  %v330_v60 = vsub.f32 1.0, %v298_v39  ;;  %v331_v0 = vsub.f32 1.0, %v299_v43  ;;  %s261_s21 = scalar_lea.vmem [#allocation8], %s1040_s8 }
  0x31   : > { %721 = vlog2.f32 %v291_v8  ;;  %s450_s22 = sshll.u32 %s447_s18, 4  ;;  %s465_s6 = sshll.u32 %s261_s21, 4  ;;  %s451_s22 = int_to_ptr.hbm [resolvable:$true] %s450_s22  ;;  %s1102_s6 = int_to_ptr.vmem [resolvable:$true] %s465_s6 }
  0x32   : > { %v712_v12 = vpop.eup %711  ;;  %723 = vlog2.f32 %v292_v10  ;;  %s467_s7 = sshll.u32 %s464_s5, 4  ;;  %s431_s8 = scalar_lea.sflag [#allocation4], %s1037_s0  ;;  %s1104_s7 = int_to_ptr.hbm [resolvable:$true] %s467_s7 }
  0x33   : > { %v714_v17 = vpop.eup %713  ;;  %v303_v18 = vmul.f32 0.6931472, %v712_v12  ;;  %725 = vlog2.f32 %v293_v13  ;;  %s817_s30 = sshra.s32 %s451_s22, 4  ;;  %s818_s30 = int_to_ptr.hbm [resolvable:$true] %s817_s30 }
  0x34   : > { %v716_v21 = vpop.eup %715  ;;  %v305_v22 = vmul.f32 0.6931472, %v714_v17  ;;  %727 = vlog2.f32 %v334_v9  ;;  %s819_s9 = scalar_lea.hbm %s818_s30, 64  ;;  %p824_p7 = scmp.lt.s32.totalorder %s818_s30, %s1157_s2 }
  0x35   : > { %v718_v25 = vpop.eup %717  ;;  %v318_v26 = vmul.f32 %v303_v18, %v1057_v4  ;;  %v307_v27 = vmul.f32 0.6931472, %v716_v21  ;;  %729 = vlog2.f32 %v335_v11  ;;  %v332_v4 = vsub.f32 1.0, %v300_v47  ;;  %p820_p4 = scmp.ne.s32.totalorder %s818_s30, %s819_s9 }
  0x36   : > { %v720_v29 = vpop.eup %719  ;;  %v319_v30 = vmul.f32 %v305_v22, %v1060_v5  ;;  %v309_v31 = vmul.f32 0.6931472, %v718_v25  ;;  %731 = vlog2.f32 %v336_v16  ;;  %v333_v5 = vsub.f32 1.0, %v301_v51 }
  0x37   : > { %v722_v33 = vpop.eup %721  ;;  %v320_v34 = vmul.f32 %v307_v27, %v1063_v7  ;;  %v311_v36 = vmul.f32 0.6931472, %v720_v29  ;;  %733 = vlog2.f32 %v337_v20  ;;  %390 = vst [vmem:[%s1074_s24] sm:$0xff] %v318_v26  ;;  %p821_p5 = pnand %p820_p4, %p998_p9 }
  0x38   : > { %v724_v37 = vpop.eup %723  ;;  %v321_v38 = vmul.f32 %v309_v31, %v297_v35  ;;  %v313_v40 = vmul.f32 0.6931472, %v722_v33  ;;  %735 = vlog2.f32 %v338_v23  ;;  %391 = vst [vmem:[%s1074_s24 + $0x8] sm:$0xff] %v319_v30 }
  0x39   : > { %v726_v41 = vpop.eup %725  ;;  %v322_v42 = vmul.f32 %v311_v36, %v298_v39  ;;  %v315_v44 = vmul.f32 0.6931472, %v724_v37  ;;  %737 = vlog2.f32 %v339_v24  ;;  %392 = vst [vmem:[%s1074_s24 + $0x10] sm:$0xff] %v320_v34  ;;  %p822_p6 = pneg %p821_p5 }
  0x3a   : > { %v728_v45 = vpop.eup %727  ;;  %v323_v46 = vmul.f32 %v313_v40, %v299_v43  ;;  %v317_v48 = vmul.f32 0.6931472, %v726_v41  ;;  %739 = vlog2.f32 %v340_v28  ;;  %393 = vst [vmem:[%s1074_s24 + $0x18] sm:$0xff] %v321_v38 }
  0x3b   : > { %v730_v49 = vpop.eup %729  ;;  %v324_v50 = vmul.f32 %v315_v44, %v300_v47  ;;  %v343_v52 = vmul.f32 0.6931472, %v728_v45  ;;  %741 = vlog2.f32 %v341_v32  ;;  %394 = vst [vmem:[%s1074_s24 + $0x20] sm:$0xff] %v322_v42 }
  0x3c   : > { %v732_v53 = vpop.eup %731  ;;  %v325_v54 = vmul.f32 %v317_v48, %v301_v51  ;;  %v345_v55 = vmul.f32 0.6931472, %v730_v49  ;;  %395 = vst [vmem:[%s1074_s24 + $0x28] sm:$0xff] %v323_v46 }
  0x3d   : > { %v734_v57 = vpop.eup %733  ;;  %v358_v58 = vmul.f32 %v343_v52, %v326_v14  ;;  %v347_v59 = vmul.f32 0.6931472, %v732_v53  ;;  %396 = vst [vmem:[%s1074_s24 + $0x30] sm:$0xff] %v324_v50 }
  0x3e   : > { %v736_v61 = vpop.eup %735  ;;  %v359_v62 = vmul.f32 %v345_v55, %v327_v15  ;;  %v349_v63 = vmul.f32 0.6931472, %v734_v57  ;;  %397 = vst [vmem:[%s1074_s24 + $0x38] sm:$0xff] %v325_v54  ;;  %s823_s24 = scalar_lea.hbm %s1157_s2, 128 }
  0x3f   : > { %v738_v1 = vpop.eup %737  ;;  %v360_v2 = vmul.f32 %v347_v59, %v328_v19  ;;  %v351_v3 = vmul.f32 0.6931472, %v736_v61  ;;  %422 = vst [vmem:[%s261_s21] sm:$0xff] %v358_v58  ;;  %p825_p8 = scmp.lt.s32.totalorder %s823_s24, %s819_s9 }
  0x40   : > { %v740_v6 = vpop.eup %739  ;;  %v361_v8 = vmul.f32 %v349_v63, %v329_v56  ;;  %v353_v9 = vmul.f32 0.6931472, %v738_v1  ;;  %423 = vst [vmem:[%s261_s21 + $0x8] sm:$0xff] %v359_v62 }
  0x41   : > { %v742_v10 = vpop.eup %741  ;;  %v362_v11 = vmul.f32 %v351_v3, %v330_v60  ;;  %v355_v12 = vmul.f32 0.6931472, %v740_v6  ;;  %424 = vst [vmem:[%s261_s21 + $0x10] sm:$0xff] %v360_v2  ;;  %p826_p10 = por %p825_p8, %p824_p7 }
  0x42   : > { %v363_v7 = vmul.f32 %v353_v9, %v331_v0  ;;  %v357_v13 = vmul.f32 0.6931472, %v742_v10  ;;  %425 = vst [vmem:[%s261_s21 + $0x18] sm:$0xff] %v361_v8 }
  0x43   : > { %v364_v14 = vmul.f32 %v355_v12, %v332_v4  ;;  %426 = vst [vmem:[%s261_s21 + $0x20] sm:$0xff] %v362_v11  ;;  %p827_p13 = pnand %p826_p10, %p822_p6 }
  0x44   : > { %v365_v15 = vmul.f32 %v357_v13, %v333_v5  ;;  %427 = vst [vmem:[%s261_s21 + $0x28] sm:$0xff] %v363_v7 }
  0x45   : > { %428 = vst [vmem:[%s261_s21 + $0x30] sm:$0xff] %v364_v14 }
  0x46   : > { %429 = vst [vmem:[%s261_s21 + $0x38] sm:$0xff] %v365_v15 }
  0x47   : > { %830 = shalt.err (!%p827_p13)
}
  0x48   : > { %s925_s11 = smov 128   ;;  %s926_s18 = smov 8  }
  0x49   : > { %638 = dma.vmem_to_hbm [thread:$0]  (%p998_p9), %s1100_s19, 1024, %s451_s22, %s431_s8, %s925_s11, %s925_s11, %s926_s18  }
  0x4a   : > { %s436_s21 = scalar_lea.sflag [#allocation9], %s1037_s0  ;;  %s845_s23 = sshra.s32 %s1104_s7, 4  ;;  %s846_s23 = int_to_ptr.hbm [resolvable:$true] %s845_s23 }
  0x4b   : > { %s847_s4 = scalar_lea.hbm %s846_s23, 64  ;;  %s851_s9 = scalar_lea.hbm %s1158_s3, 128 }
  0x4c   : > { %p848_p0 = scmp.ne.s32.totalorder %s846_s23, %s847_s4  ;;  %p852_p3 = scmp.lt.s32.totalorder %s846_s23, %s1158_s3 }
  0x4d   : > { %p853_p4 = scmp.lt.s32.totalorder %s851_s9, %s847_s4 }
  0x4e   : > { %p849_p1 = pnand %p848_p0, %p998_p9 }
  0x4f   : > { %p854_p5 = por %p853_p4, %p852_p3 }
  0x50   : > { %p850_p2 = pneg %p849_p1 }
  0x52   : > { %p855_p6 = pnand %p854_p5, %p850_p2 }
  0x54   : > { %858 = shalt.err (!%p855_p6)
}
  0x55   : > { %639 = dma.vmem_to_hbm [thread:$0]  (%p998_p9), %s1102_s6, 1024, %s1104_s7, %s436_s21, %s925_s11, %s925_s11, %s926_s18  }
  0x56 PF: > { %s482_s0 = sand.u32 1, %s901_s12   ;;  %p650_p7 = pnand %p610_p12, %p1005_p11 }
  0x57   : > { %s483_s19 = scalar_lea.sflag [#allocation4], %s482_s0 }
  0x58   : > { %p651_p8 = pneg %p650_p7 }
  0x5a   : > { %892 = dma.done.wait (%p651_p8), %s483_s19, 1024  }
  0x5b   : > { %894 = vsyncadd (%p651_p8), %s483_s19, 4294966272  ;;  %s493_s22 = scalar_lea.sflag [#allocation9], %s482_s0 }
  0x5c   : > { %896 = dma.done.wait (%p651_p8), %s493_s22, 1024  }
  0x5d   : > { %898 = vsyncadd (%p651_p8), %s493_s22, 4294966272  ;;  %s26_s17 = sadd.s32 1, %s921_s17   ;;  %s1166_s12 = smov %s905_s13 }
  0x5e   : > { %p23_p10 = scmp.ge.s32.totalorder %s26_s17, 4   ;;  %s1167_s13 = smov %s909_s14 }
  0x5f   : > { %s1168_s14 = smov %s1003_s26  ;;  %s1169_s15 = smov %s917_s16 }
  0x60   : > { %s1170_s16 = smov %s1172_s20  ;;  %25 = sbr.rel (!%p23_p10) target bundleno = 12 (0xc), region = 107 }
  0x65   :  { %499 = vsyncpa [#allocation3], 1 }
  0x66   :  { %501 = vsyncpa [#allocation3 + $0x1], 1 }
  0x67   :  { %502 = vsyncpa [#allocation6], 1 }
  0x68   :  { %504 = vsyncpa [#allocation6 + $0x1], 1 }
  0x69   :  { %505 = vsyncpa [#allocation4], 1 }
  0x6a   :  { %507 = vsyncpa [#allocation4 + $0x1], 1 }
  0x6b   :  { %508 = vsyncpa [#allocation9], 1 }
  0x6c   :  { %510 = vsyncpa [#allocation9 + $0x1], 1 }

</bundles_post_ra>
